<compile_context>
chip_gen: v6e
topology: v6e:2x2x1
jax: 0.10.0
libtpu: 0.0.40
codegen_flags: <defaults>
</compile_context>

<pallas_src>
import functools

import jax
import jax.numpy as jnp
from jax.experimental import pallas as pl
from jax.experimental.pallas import tpu as pltpu

LEAKY_SLOPE = 0.01  # nn.LeakyReLU() default negative_slope


def _class_head_kernel(num_hidden, x_ref, *refs):
    """refs = (w0, b0, ..., w_{H-1}, b_{H-1}, w_diff, b_diff, out_ref).

    x_ref:   (rows, c0) bf16 batch-major tile of the input.
    w_i:     (c_{i+1}, c_i) bf16 (PyTorch layout);  b_i: (c_{i+1}, 1) f32.
    w_diff:  (1, c_last) bf16 = W_last[1,:] - W_last[0,:];  b_diff: (1, 1) f32.
    out_ref: (2, rows) -- row 0 = p(class 0), row 1 = p(class 1)  (feature-major).
    """
    out_ref = refs[-1]
    p = refs[:-1]
    assert len(p) == 2 * num_hidden + 2

    x = x_ref[...]  # bf16 (rows, c0)

    def first_dot(w):
        # Contract the feature dim of the batch-major x tile directly (trans-B form):
        # (cout, c0) x (rows, c0)^T -> (cout, rows) feature-major, f32 accumulation.
        return jax.lax.dot_general(
            w, x, dimension_numbers=(((1,), (1,)), ((), ())),
            preferred_element_type=jnp.float32)

    if num_hidden == 0:
        d = first_dot(p[0][...]) + p[1][...]
    else:
        h = first_dot(p[0][...]) + p[1][...]
        h = jnp.maximum(h, LEAKY_SLOPE * h)              # LeakyReLU (exact for slope < 1)
        for i in range(1, num_hidden):
            w = p[2 * i][...]                            # bf16 (c_{i+1}, c_i)
            b = p[2 * i + 1][...]                        # f32  (c_{i+1}, 1)
            h = jnp.dot(w, h.astype(jnp.bfloat16),
                        preferred_element_type=jnp.float32) + b
            h = jnp.maximum(h, LEAKY_SLOPE * h)
        w_d = p[2 * num_hidden][...]                     # bf16 (1, c_last)
        b_d = p[2 * num_hidden + 1][...]                 # f32  (1, 1)
        d = jnp.dot(w_d, h.astype(jnp.bfloat16),
                    preferred_element_type=jnp.float32) + b_d

    # 2-class softmax via the sigmoid identity: d = z1 - z0, p0 = 1/(1+exp(d)).
    # Clamp keeps exp() finite in f32; |d| >= 30 is already fully saturated.
    d = jnp.clip(d, -30.0, 30.0)
    p0 = pl.reciprocal(1.0 + jnp.exp(d), approx=True)    # divide lands on the EUP slot
    out_ref[0:1, :] = p0.astype(out_ref.dtype)
    out_ref[1:2, :] = (1.0 - p0).astype(out_ref.dtype)


def _prepare_params(params):
    """params: PyTorch-layout [(w (cout, cin) f32, b (cout,) f32), ...].

    Returns flat [w0, b0, ..., w_{H-1}, b_{H-1}, w_diff, b_diff] with weights pre-cast to
    bf16 once (biases stay f32) so the kernel body does no per-grid-step weight casts, and
    the final Linear(., 2) folded into a single logit-difference channel.
    """
    flat = []
    for (w, b) in params[:-1]:
        flat.append(w.astype(jnp.bfloat16))
        flat.append(b.reshape(-1, 1).astype(jnp.float32))
    w_last, b_last = params[-1]
    flat.append((w_last[1, :] - w_last[0, :]).reshape(1, -1).astype(jnp.bfloat16))
    flat.append((b_last[1] - b_last[0]).reshape(1, 1).astype(jnp.float32))
    return flat


def class_head_forward(x, params, *, block_b=1024, grid_free_max=256):
    """x: (B, filters[0]). params: PyTorch-layout [(w (cout, cin), b (cout,)), ...].

    Returns (B, 2) softmax probabilities in x's dtype.
    """
    B, cin0 = x.shape
    num_hidden = len(params) - 1
    kernel = functools.partial(_class_head_kernel, num_hidden)
    flat = _prepare_params(params)
    x_bf16 = x.astype(jnp.bfloat16)   # halves the only B-scaled HBM stream; no-op if bf16

    if B <= grid_free_max:
        # Grid-free single shot: every operand is one whole VMEM block; no pipeline
        # prologue/epilogue for a degenerate single grid step.
        vmem = pl.BlockSpec(memory_space=pltpu.MemorySpace.VMEM)
        out_fm = pl.pallas_call(
            kernel,
            out_shape=jax.ShapeDtypeStruct((2, B), x.dtype),
            in_specs=[vmem] * (1 + len(flat)),
            out_specs=vmem,
        )(x_bf16, *flat)
        return out_fm.T

    # Batched path: tile the batch (lane axis of the feature-major output).  Weights and
    # biases use constant index_maps so they stay VMEM-resident across all grid steps.
    assert block_b % 128 == 0, "block_b must be a multiple of 128"
    eff_block = block_b
    # Keep >= 2 grid steps whenever possible so v7x can shard the batch across both TCs.
    while eff_block > 128 and pl.cdiv(B, eff_block) < 2:
        eff_block //= 2
    grid = (pl.cdiv(B, eff_block),)   # ragged last block -> no jnp.pad copy of x in HBM

    in_specs = [pl.BlockSpec((eff_block, cin0), lambda i: (i, 0))]
    # NOTE: if profiling shows exposed x-tile DMA (per-tile compute is only a few hundred
    # ns), add pipeline_mode=pl.Buffered(3) to this first BlockSpec only.
    for prm in flat:
        in_specs.append(pl.BlockSpec(prm.shape, lambda i: (0, 0)))

    out_fm = pl.pallas_call(
        kernel,
        out_shape=jax.ShapeDtypeStruct((2, B), x.dtype),
        grid=grid,
        in_specs=in_specs,
        out_specs=pl.BlockSpec((2, eff_block), lambda i: (0, i)),
        compiler_params=pltpu.CompilerParams(
            dimension_semantics=("parallel",),   # batch rows independent -> 2 TCs on v7x
            vmem_limit_bytes=32 << 20,           # safe on every generation incl. v7x
        ),
    )(x_bf16, *flat)
    return out_fm.T   # tiny (2, B) -> (B, 2) transpose


def init_class_head_params(key, filters):
    """PyTorch-layout params matching ClassHead(filters).

    Hidden layers: Linear(filters[i], filters[i+1]); final: Linear(filters[-1], 2).
    Returns [(w (cout, cin), b (cout,)), ...] with nn.Linear's default uniform init.
    """
    dims = list(zip(filters[:-1], filters[1:])) + [(filters[-1], 2)]
    params = []
    for (cin, cout) in dims:
        key, kw, kb = jax.random.split(key, 3)
        bound = 1.0 / (cin ** 0.5)
        w = jax.random.uniform(kw, (cout, cin), jnp.float32, -bound, bound)
        b = jax.random.uniform(kb, (cout,), jnp.float32, -bound, bound)
        params.append((w, b))
    return params


def class_head_reference(x, params):
    """Pure-JAX f32 reference with PyTorch semantics (for correctness checking)."""
    h = x
    for i, (w, b) in enumerate(params):
        h = h @ w.T + b
        if i < len(params) - 1:
            h = jnp.where(h >= 0.0, h, LEAKY_SLOPE * h)
    return jax.nn.softmax(h, axis=-1)


if __name__ == "__main__":
    key = jax.random.PRNGKey(0)
    filters = [32, 64, 32]

    k_p, k_x1, k_x2 = jax.random.split(key, 3)
    params = init_class_head_params(k_p, filters)

    # --- small batch: grid-free single-block path ---
    x_small = jax.random.normal(k_x1, (8, filters[0]), jnp.float32)
    out_small = jax.block_until_ready(class_head_forward(x_small, params))
    ref_small = class_head_reference(x_small, params)
    assert out_small.shape == (8, 2), out_small.shape
    err_s = float(jnp.max(jnp.abs(out_small - ref_small)))
    # bf16 MXU operands + approx reciprocal -> matching tolerance.
    assert err_s < 2e-2, f"small-batch mismatch: max abs err {err_s}"

    # --- larger batch: tiled feature-major path (2 parallel grid steps, ragged last block) ---
    x_big = jax.random.normal(k_x2, (1000, filters[0]), jnp.float32)
    out_big = jax.block_until_ready(class_head_forward(x_big, params, block_b=512))
    ref_big = class_head_reference(x_big, params)
    assert out_big.shape == (1000, 2), out_big.shape
    err_b = float(jnp.max(jnp.abs(out_big - ref_big)))
    assert err_b < 2e-2, f"batched mismatch: max abs err {err_b}"

    print("KERNEL_OK")
</pallas_src>

<mosaic_0001>
module attributes {stable_mosaic.version = 11 : i64} {
  func.func @_class_head_kernel(%arg0: memref<8x32xbf16, #tpu.memory_space<vmem>>, %arg1: memref<64x32xbf16, #tpu.memory_space<vmem>>, %arg2: memref<64x1xf32, #tpu.memory_space<vmem>>, %arg3: memref<32x64xbf16, #tpu.memory_space<vmem>>, %arg4: memref<32x1xf32, #tpu.memory_space<vmem>>, %arg5: memref<1x32xbf16, #tpu.memory_space<vmem>>, %arg6: memref<1x1xf32, #tpu.memory_space<vmem>>, %arg7: memref<2x8xf32, #tpu.memory_space<vmem>>) attributes {dimension_semantics = [], scalar_prefetch = 0 : i64, scratch_operands = 0 : i64, tpu.core_type = #tpu.core_type<tc>} {
    %c0 = arith.constant 0 : index
    %c0_0 = arith.constant 0 : index
    %0 = vector.load %arg0[%c0, %c0_0] : memref<8x32xbf16, #tpu.memory_space<vmem>>, vector<8x32xbf16>
    %c0_1 = arith.constant 0 : index
    %c0_2 = arith.constant 0 : index
    %1 = vector.load %arg1[%c0_1, %c0_2] : memref<64x32xbf16, #tpu.memory_space<vmem>>, vector<64x32xbf16>
    %cst = arith.constant dense<0.000000e+00> : vector<64x8xf32>
    %2 = tpu.matmul %1, %0, %cst {dimension_numbers = #tpu.dot_dimension_numbers<[1], [1], [0], [0], [0, 0, 1, 0], [], []>} : vector<64x32xbf16>, vector<8x32xbf16>, vector<64x8xf32> -> vector<64x8xf32>
    %c0_3 = arith.constant 0 : index
    %c0_4 = arith.constant 0 : index
    %3 = vector.load %arg2[%c0_3, %c0_4] : memref<64x1xf32, #tpu.memory_space<vmem>>, vector<64x1xf32>
    %4 = vector.broadcast %3 : vector<64x1xf32> to vector<64x8xf32>
    %5 = arith.addf %2, %4 : vector<64x8xf32>
    %cst_5 = arith.constant 0.00999999977 : f32
    %6 = vector.broadcast %cst_5 : f32 to vector<64x8xf32>
    %7 = arith.mulf %6, %5 : vector<64x8xf32>
    %8 = arith.maximumf %5, %7 : vector<64x8xf32>
    %c0_6 = arith.constant 0 : index
    %c0_7 = arith.constant 0 : index
    %9 = vector.load %arg3[%c0_6, %c0_7] : memref<32x64xbf16, #tpu.memory_space<vmem>>, vector<32x64xbf16>
    %c0_8 = arith.constant 0 : index
    %c0_9 = arith.constant 0 : index
    %10 = vector.load %arg4[%c0_8, %c0_9] : memref<32x1xf32, #tpu.memory_space<vmem>>, vector<32x1xf32>
    %11 = arith.truncf %8 : vector<64x8xf32> to vector<64x8xbf16>
    %cst_10 = arith.constant dense<0.000000e+00> : vector<32x8xf32>
    %12 = tpu.matmul %9, %11, %cst_10 {dimension_numbers = #tpu.dot_dimension_numbers<[1], [0], [0], [1], [0, 0, 1, 1], [], []>} : vector<32x64xbf16>, vector<64x8xbf16>, vector<32x8xf32> -> vector<32x8xf32>
    %13 = vector.broadcast %10 : vector<32x1xf32> to vector<32x8xf32>
    %14 = arith.addf %12, %13 : vector<32x8xf32>
    %cst_11 = arith.constant 0.00999999977 : f32
    %15 = vector.broadcast %cst_11 : f32 to vector<32x8xf32>
    %16 = arith.mulf %15, %14 : vector<32x8xf32>
    %17 = arith.maximumf %14, %16 : vector<32x8xf32>
    %c0_12 = arith.constant 0 : index
    %c0_13 = arith.constant 0 : index
    %18 = vector.load %arg5[%c0_12, %c0_13] : memref<1x32xbf16, #tpu.memory_space<vmem>>, vector<1x32xbf16>
    %c0_14 = arith.constant 0 : index
    %c0_15 = arith.constant 0 : index
    %19 = vector.load %arg6[%c0_14, %c0_15] : memref<1x1xf32, #tpu.memory_space<vmem>>, vector<1x1xf32>
    %20 = arith.truncf %17 : vector<32x8xf32> to vector<32x8xbf16>
    %cst_16 = arith.constant dense<0.000000e+00> : vector<1x8xf32>
    %21 = tpu.matmul %18, %20, %cst_16 {dimension_numbers = #tpu.dot_dimension_numbers<[1], [0], [0], [1], [0, 0, 1, 1], [], []>} : vector<1x32xbf16>, vector<32x8xbf16>, vector<1x8xf32> -> vector<1x8xf32>
    %22 = vector.broadcast %19 : vector<1x1xf32> to vector<1x8xf32>
    %23 = arith.addf %21, %22 : vector<1x8xf32>
    %cst_17 = arith.constant -3.000000e+01 : f32
    %cst_18 = arith.constant 3.000000e+01 : f32
    %24 = vector.broadcast %cst_17 : f32 to vector<1x8xf32>
    %25 = arith.maximumf %24, %23 : vector<1x8xf32>
    %26 = vector.broadcast %cst_18 : f32 to vector<1x8xf32>
    %27 = arith.minimumf %26, %25 : vector<1x8xf32>
    %28 = math.exp %27 : vector<1x8xf32>
    %cst_19 = arith.constant 1.000000e+00 : f32
    %29 = vector.broadcast %cst_19 : f32 to vector<1x8xf32>
    %30 = arith.addf %29, %28 : vector<1x8xf32>
    %31 = tpu.reciprocal %30 {approx = true} : vector<1x8xf32> -> vector<1x8xf32>
    %c0_20 = arith.constant 0 : index
    %c0_21 = arith.constant 0 : index
    %32 = vector.load %arg7[%c0_20, %c0_21] : memref<2x8xf32, #tpu.memory_space<vmem>>, vector<1x8xf32>
    tpu.vector_store %arg7[%c0_20, %c0_21], %31 {strides = array<i32>} : memref<2x8xf32, #tpu.memory_space<vmem>>, vector<1x8xf32>,
    %cst_22 = arith.constant 1.000000e+00 : f32
    %33 = vector.broadcast %cst_22 : f32 to vector<1x8xf32>
    %34 = arith.subf %33, %31 : vector<1x8xf32>
    %c1 = arith.constant 1 : index
    %c0_23 = arith.constant 0 : index
    %35 = vector.load %arg7[%c1, %c0_23] : memref<2x8xf32, #tpu.memory_space<vmem>>, vector<1x8xf32>
    tpu.vector_store %arg7[%c1, %c0_23], %34 {strides = array<i32>} : memref<2x8xf32, #tpu.memory_space<vmem>>, vector<1x8xf32>,
    return
  }
}

</mosaic_0001>

<bundles_post_ra>
// kernel: tpu_custom_call.1
= control target key start
LH: loop header
LB: loop body
LE: loop exit
PB: predicated region body
PF: predicated region fallthrough
CT: control target
= control target key end

     0   :  { %s606_s0 = inlined_call_operand.vmem [shape: bf16[8,32], index: 0, kind: input, shape index: {}]   ;;  %s607_s1 = inlined_call_operand.vmem [shape: bf16[64,32], index: 1, kind: input, shape index: {}]   ;;  %s608_s2 = inlined_call_operand.vmem [shape: f32[64,1], index: 2, kind: input, shape index: {}]   ;;  %s609_s3 = inlined_call_operand.vmem [shape: bf16[32,64], index: 3, kind: input, shape index: {}]   ;;  %s610_s4 = inlined_call_operand.vmem [shape: f32[32,1], index: 4, kind: input, shape index: {}]   ;;  %s611_s5 = inlined_call_operand.vmem [shape: bf16[1,32], index: 5, kind: input, shape index: {}]   ;;  %s612_s6 = inlined_call_operand.<no memory space> [shape: f32[1,1], index: 6, kind: input, shape index: {}]   ;;  %s613_s7 = inlined_call_operand.hbm [shape: f32[2,8], index: 7, kind: output, shape index: {}]  }
   0x1   :  { %v12_v0 = vstv %s612_s6 }
   0x2   :  { %13 = vst [vmem:[#allocation2] sm:$0x1] %v12_v0 }
   0x3   :  { %v30_v1 = vld [vmem:[%s606_s0] sm:$0xf]  ;;  %vm107_vm0 = vcmask 261120   ;;  %v487_v4 = vmov 0   ;;  %v45_v5 = vld [vmem:[%s608_s2 + $0x30] sm:$0xff]  ;;  %v456_v6 = vld [vmem:[%s607_s1 + $0x8] sm:$0xff]  }
   0x4   :  { %v455_v2 = vld [vmem:[%s607_s1] sm:$0xff]   ;;  %448 = vmatprep.subr.msk.bf16.mxu0 %vm107_vm0, %v30_v1  ;;  %v121_v3 = vsel %vm107_vm0, %v30_v1, 0  ;;  %453 = vset.pattern.permute.xlu0 %v487_v4  ;;  %v457_v8 = vld [vmem:[%s607_s1 + $0x10] sm:$0xff]   ;;  %v46_v9 = vld [vmem:[%s608_s2 + $0x38] sm:$0xff] }
   0x5   :  { %419 = vmatpush3.bf16.xpose.msra.mxu0 %v121_v3  ;;  %420 = vmatprep.mubr.msk.bf16.mxu0 %vm107_vm0, %v455_v2  ;;  %v43_v7 = vld [vmem:[%s608_s2 + $0x20] sm:$0xff]  ;;  %v44_v10 = vld [vmem:[%s608_s2 + $0x28] sm:$0xff]  ;;  %v41_v11 = vld [vmem:[%s608_s2 + $0x10] sm:$0xff] }
   0x6   :  { %454 = vset.pattern.permute.xlu1 %v487_v4  ;;  %79 = vperm.xlu0 %453, %v45_v5  }
   0x7   :  { %69 = vperm.xlu1 %454, %v43_v7  }
   0xa   :  { %84 = vperm.xlu0 %453, %v46_v9  }
   0xb   :  { %74 = vperm.xlu1 %454, %v44_v10  }
   0xc   :  { %421 = vmatmul.mubr.msk.bf16.vlgmr.msra.gmra.mxu0 %vm107_vm0, %v456_v6 }
   0xd   :  { %424 = vmatprep.mubr.msk.bf16.mxu0 %vm107_vm0, %v457_v8 }
   0xe   :  { %14 = vsyncpa [#allocation4], 0  ;;  %v42_v12 = vld [vmem:[%s608_s2 + $0x18] sm:$0xff]  ;;  %59 = vperm.xlu0 %453, %v41_v11   ;;  %v39_v14 = vld [vmem:[%s608_s2] sm:$0xff]  ;;  %vm246_vm1 = vcmask 523264   ;;  %v488_v3 = vmov 0.0  }
   0xf   :  { %v458_v13 = vld [vmem:[%s607_s1 + $0x18] sm:$0xff]   ;;  %64 = vperm.xlu1 %454, %v42_v12   ;;  %v40_v15 = vld [vmem:[%s608_s2 + $0x8] sm:$0xff]  ;;  %v210_v16 = vld [vmem:[%s610_s4 + $0x10] sm:$0xff]  ;;  %440 = vmatprep.subr.bf16.mxu0 %v488_v3  ;;  %vm489_vm2 = vmmov 0   ;;  %vm372_vm3 = vcmask 57344  }
  0x10   :  { %v211_v17 = vld [vmem:[%s610_s4 + $0x18] sm:$0xff]  ;;  %v208_v18 = vld [vmem:[%s610_s4] sm:$0xff]  ;;  %v209_v19 = vld [vmem:[%s610_s4 + $0x8] sm:$0xff] }
  0x11   :  { %v311_v20 = vld [vmem:[#allocation2] sm:$0x1]  ;;  %v460_v2 = vld [vmem:[%s609_s3 + $0x8] sm:$0xff]  }
  0x12   :  { %49 = vperm.xlu0 %453, %v39_v14   ;;  %v459_v21 = vld [vmem:[%s609_s3] sm:$0xff]  }
  0x13   :  { %54 = vperm.xlu1 %454, %v40_v15   ;;  %436 = vmatprep.mubr.msk.bf16.mxu1 %vm246_vm1, %v459_v21 }
  0x14   :  { %425 = vmatmul.mubr.msk.bf16.gmra.mxu0 %vm107_vm0, %v458_v13 }
  0x15   :  { %444 = vmatprep.mubr.msk.bf16.mxu0 %vm489_vm2, %v488_v3 }
  0x16   :  { %228 = vperm.xlu0 %453, %v210_v16  }
  0x17   :  { %233 = vperm.xlu1 %454, %v211_v17  }
  0x1a   :  { %218 = vperm.xlu0 %453, %v208_v18  }
  0x1b   :  { %223 = vperm.xlu1 %454, %v209_v19  }
  0x1e   :  { %316 = vperm.xlu0 %453, %v311_v20  }
  0x81   :  { %v80_v23 = vpop.permute.xlu0 %79 }
  0x82   :  { %v70_v22 = vpop.permute.xlu1 %69 }
  0x85   :  { %v85_v28 = vpop.permute.xlu0 %84 }
  0x86   :  { %v75_v26 = vpop.permute.xlu1 %74 }
  0x89   :  { %v60_v35 = vpop.permute.xlu0 %59 }
  0x8a   :  { %v65_v32 = vpop.permute.xlu1 %64 }
  0x8d   :  { %v50_v51 = vpop.permute.xlu0 %49 }
  0x8e   :  { %v55_v45 = vpop.permute.xlu1 %54 }
  0x91   :  { %v229_v4 = vpop.permute.xlu0 %228 }
  0x92   :  { %v234_v5 = vpop.permute.xlu1 %233 }
  0x95   :  { %v219_v9 = vpop.permute.xlu0 %218 }
  0x96   :  { %v224_v14 = vpop.permute.xlu1 %223 }
  0xcc   :  { %v422_v24 = vpop.f32.mrf.mxu0 }
  0xcd   :  { %v166_v40 = vadd.f32 %v422_v24, %v60_v35 }
  0xce   :  { %v157_v25 = vpop.f32.mrf.mxu0 }
  0xcf   :  { %v190_v52 = vmul.f32 0.01, %v166_v40  ;;  %v158_v53 = vadd.f32 %v157_v25, %v50_v51 }
  0xd0   :  { %v423_v27 = vpop.f32.mrf.mxu0 }
  0xd1   :  { %v169_v36 = vadd.f32 %v423_v27, %v65_v32  ;;  %v198_v60 = vmax.f32 %v166_v40, %v190_v52  ;;  %v188_v61 = vmul.f32 0.01, %v158_v53  ;;  %v319_v27 = vlaneseq }
  0xd2   :  { %v160_v29 = vpop.f32.mrf.mxu0 }
  0xd3   :  { %v191_v46 = vmul.f32 0.01, %v169_v36  ;;  %v161_v47 = vadd.f32 %v160_v29, %v55_v45  ;;  %v196_v0 = vmax.f32 %v158_v53, %v188_v61 }
  0xd4   :  { %v426_v30 = vpop.f32.mrf.mxu0 }
  0xd5   :  { %v182_v31 = vadd.f32 %v426_v30, %v80_v23  ;;  %v199_v57 = vmax.f32 %v169_v36, %v191_v46  ;;  %v189_v58 = vmul.f32 0.01, %v161_v47  ;;  %v317_v30 = vpop.permute.xlu0 %316 }
  0xd6   :  { %v173_v33 = vpop.f32.mrf.mxu0 }
  0xd7   :  { %v174_v34 = vadd.f32 %v173_v33, %v70_v22  ;;  %v194_v38 = vmul.f32 0.01, %v182_v31  ;;  %v197_v62 = vmax.f32 %v161_v47, %v189_v58  ;;  %v213_v63 = vpack.c.bf16 %v199_v57, %v198_v60 }
  0xd8   :  { %v427_v37 = vpop.f32.mrf.mxu0 }
  0xd9   :  { %v185_v39 = vadd.f32 %v427_v37, %v85_v28  ;;  %v192_v42 = vmul.f32 0.01, %v174_v34  ;;  %v202_v48 = vmax.f32 %v182_v31, %v194_v38  ;;  %v212_v1 = vpack.c.bf16 %v197_v62, %v196_v0 }
  0xda   :  { %v176_v41 = vpop.f32.mrf.mxu0  ;;  %v320_v28 = vshrl.u32 %v319_v27, 7 }
  0xdb   :  { %v195_v43 = vmul.f32 0.01, %v185_v39  ;;  %v177_v44 = vadd.f32 %v176_v41, %v75_v26  ;;  %v200_v54 = vmax.f32 %v174_v34, %v192_v42  ;;  %v310_v26 = vld [vmem:[%s611_s5] sm:$0x1]  ;;  %s490_s5 = smov [#allocation3]  }
  0xdc   :  { %v321_v29 = vsub.s32 0, %v320_v28  ;;  %s382_s12 = sshll.u32 %s490_s5, 4  ;;  %s383_s12 = int_to_ptr.vmem [resolvable:$true] %s382_s12 }
  0xdd   :  { %v203_v49 = vmax.f32 %v185_v39, %v195_v43  ;;  %v193_v50 = vmul.f32 0.01, %v177_v44  ;;  %s465_s13 = scalar_lea.vmem %s383_s12, 32  ;;  %p470_p1 = scmp.lt.s32.totalorder %s383_s12, %s383_s12 }
  0xde   :  { %v322_v31 = vrot.slane %v317_v30, %v321_v29  ;;  %p466_p0 = scmp.ne.s32.totalorder %s383_s12, %s465_s13  ;;  %p471_p2 = scmp.lt.s32.totalorder %s465_s13, %s465_s13 }
  0xdf   :  { %v201_v55 = vmax.f32 %v177_v44, %v193_v50  ;;  %v215_v56 = vpack.c.bf16 %v203_v49, %v202_v48 }
  0xe0   :  { %p472_p3 = por %p471_p2, %p470_p1 }
  0xe1   :  { %428 = vmatprep.subr.bf16.mxu1 %v215_v56  ;;  %v214_v59 = vpack.c.bf16 %v201_v55, %v200_v54 }
  0xe2   :  { %429 = vmatpush3.bf16.msra.mxu1 %v215_v56  ;;  %p473_p4 = pnand %p472_p3, %p466_p0 }
  0xe3   :  { %430 = vmatprep.subr.bf16.mxu1 %v214_v59 }
  0xe6   :  { %431 = vmatpush3.bf16.msra.mxu1 %v214_v59 }
  0xe7   :  { %432 = vmatprep.subr.bf16.mxu1 %v213_v63 }
  0xea   :  { %433 = vmatpush3.bf16.msra.mxu1 %v213_v63 }
  0xeb   :  { %434 = vmatprep.subr.bf16.mxu1 %v212_v1 }
  0xee   :  { %435 = vmatpush3.bf16.msra.mxu1 %v212_v1 }
  0xf1   :  { %437 = vmatmul.mubr.msk.bf16.vlgmr.msra.gmra.mxu1 %vm246_vm1, %v460_v2 }
 0x1b1   :  { %v438_v6 = vpop.f32.mrf.mxu1 }
 0x1b2   :  { %v296_v7 = vadd.f32 %v438_v6, %v229_v4 }
 0x1b3   :  { %v287_v8 = vpop.f32.mrf.mxu1 }
 0x1b4   :  { %v304_v11 = vmul.f32 0.01, %v296_v7  ;;  %v288_v12 = vadd.f32 %v287_v8, %v219_v9 }
 0x1b5   :  { %v439_v10 = vpop.f32.mrf.mxu1 }
 0x1b6   :  { %v299_v13 = vadd.f32 %v439_v10, %v234_v5  ;;  %v308_v18 = vmax.f32 %v296_v7, %v304_v11  ;;  %v302_v19 = vmul.f32 0.01, %v288_v12 }
 0x1b7   :  { %v290_v15 = vpop.f32.mrf.mxu1 }
 0x1b8   :  { %v305_v16 = vmul.f32 0.01, %v299_v13  ;;  %v291_v17 = vadd.f32 %v290_v15, %v224_v14  ;;  %v306_v24 = vmax.f32 %v288_v12, %v302_v19 }
 0x1ba   :  { %v309_v20 = vmax.f32 %v299_v13, %v305_v16  ;;  %v303_v21 = vmul.f32 0.01, %v291_v17 }
 0x1bc   :  { %v313_v22 = vpack.c.bf16 %v309_v20, %v308_v18  ;;  %v307_v23 = vmax.f32 %v291_v17, %v303_v21 }
 0x1be   :  { %441 = vmatpush3.bf16.msra.mxu0 %v313_v22  ;;  %v312_v25 = vpack.c.bf16 %v307_v23, %v306_v24 }
 0x1bf   :  { %442 = vmatprep.subr.bf16.mxu0 %v488_v3 }
 0x1c2   :  { %443 = vmatpush3.bf16.msra.mxu0 %v312_v25 }
 0x1c5   :  { %445 = vmatmul.mubr.msk.bf16.vlgmr.msra.gmra.mxu0 %vm107_vm0, %v310_v26 }
 0x285   :  { %v360_v32 = vpop.f32.mrf.mxu0 }
 0x286   :  { %v361_v33 = vadd.f32 %v360_v32, %v322_v31 }
 0x287   :  { %v446_v34 = vpop.f32.mrf.mxu0 }
 0x288   :  { %v403_v35 = vclamps-f32 %v361_v33, 30.0 }
 0x289   :  { %v363_v36 = vpop.f32.mrf.mxu0 }
 0x28a   :  { %v368_v37 = vmul.f32 1.442695, %v403_v35 }
 0x28b   :  { %v447_v38 = vpop.f32.mrf.mxu0 }
 0x28c   :  { %461 = vpow2.f32 %v368_v37 }
 0x299   :  { %v462_v39 = vpop.eup %461 }
 0x29a   :  { %v370_v40 = vadd.f32 1.0, %v462_v39 }
 0x29c   :  { %463 = vrcp.f32 %v370_v40 }
 0x2a9   :  { %v464_v41 = vpop.eup %463 }
 0x2aa   :  { %373 = vst.msk [vmem:[#allocation3] sm:$0x1] %vm372_vm3, %v464_v41  ;;  %v374_v42 = vsub.f32 1.0, %v464_v41 }
 0x2ac   :  { %375 = vst.msk [vmem:[#allocation3 + $0x1] sm:$0x1] %vm372_vm3, %v374_v42 }
 0x2ad   :  { %476 = shalt.err (!%p473_p4)
}
 0x2ae   :  { %385 = dma.vmem_to_hbm [thread:$0]  %s383_s12, 32, %s613_s7, [#allocation4]  }
 0x2af   :  { %485 = dma.done.wait [#allocation4], 32  }
 0x2b0   :  { %486 = vsyncadd [#allocation4], 4294967264 }
 0x2b1   :  { %389 = vsyncpa [#allocation4], 1 }

</bundles_post_ra>
